<compile_context>
chip_gen: v7x
topology: tpu7x:2x2x1
jax: 0.10.0
libtpu: 0.0.40
codegen_flags: <defaults>
</compile_context>

<pallas_src>
import functools

import jax
import jax.numpy as jnp
from jax.experimental import pallas as pl
from jax.experimental.pallas import tpu as pltpu

COMPUTE_DTYPE = jnp.bfloat16   # MXU input dtype; accumulation & epilogue stay f32.
LANE = 128                     # lane width (last-dim tiling unit)
SUBLANE = 16                   # sublane multiple for bf16 blocks


def _round_up(a: int, b: int) -> int:
    return ((a + b - 1) // b) * b


def _vmem_capacity_bytes() -> int:
    """Physical VMEM per TensorCore; conservative 64 MiB fallback (v7x) if unavailable."""
    try:
        info = pltpu.get_tpu_info()
        cap = int(getattr(info, "vmem_capacity_bytes", 0))
        if cap > 0:
            return cap
    except Exception:
        pass
    return 64 << 20


def _tile_plan(in_dim: int, out_dim: int):
    """Batch-independent tile plan (tn/tk/np_/kp depend only on the layer dims + chip),
    so weight padding in prepare_params matches every forward call."""
    vmem = _vmem_capacity_bytes()
    budget = (vmem * 3) // 8          # ~24 MiB on v7x (64 MiB VMEM), ~48 MiB on v5e/v6e
    if vmem <= (64 << 20):            # v7x-class: 64 MiB VMEM per TC
        tm, tn, tk = 512, 1024, 1024
    else:                             # v5e / v6e: 128 MiB VMEM
        tm, tn, tk = 512, 1024, 2048
    tn = min(tn, _round_up(out_dim, LANE))
    tk = min(tk, _round_up(in_dim, LANE))

    def footprint(tm_, tn_, tk_):
        # Worst case: f32 x tiles (unpadded direct path), 3-deep W buffering, f32 out tiles.
        return 2 * tm_ * tk_ * 4 + 3 * tk_ * tn_ * 2 + 2 * tm_ * tn_ * 4 + 2 * tn_ * 4

    # Safety shrink loop: guarantees the pipelined footprint fits the per-generation budget.
    while footprint(tm, tn, tk) > budget:
        if tk >= tn and tk >= tm and tk > LANE:
            tk //= 2
        elif tn >= tm and tn > LANE:
            tn //= 2
        elif tm > SUBLANE:
            tm //= 2
        else:
            break

    np_ = _round_up(out_dim, tn)
    kp = _round_up(in_dim, tk)
    return tm, tn, tk, np_, kp, vmem, footprint(tm, tn, tk)


def mlp_layer_kernel(x_ref, w_ref, s_ref, o_ref):
    """o = relu(x @ W' + shift'), accumulated directly in the (K-invariant) f32 output tile."""
    k = pl.program_id(2)

    @pl.when(k == 0)
    def _():
        o_ref[...] = jnp.zeros_like(o_ref)

    # Per-tile bf16 cast of x is free VPU work under the MXU slot (handles f32 or bf16 input).
    o_ref[...] += jnp.dot(x_ref[...].astype(COMPUTE_DTYPE), w_ref[...],
                          preferred_element_type=jnp.float32)

    @pl.when(k == pl.num_programs(2) - 1)
    def _():
        y = o_ref[...] + s_ref[...]                            # fused bias + BN shift (f32)
        o_ref[...] = jnp.maximum(y, 0.0).astype(o_ref.dtype)   # ReLU; dropout = identity (eval)


def prepare_params(weight, bias, gamma, beta, running_mean, running_var, eps=1e-5):
    """One-time (model-load) fold of BatchNorm into the Linear weights, padded to
    lane-dense tiles and cast to the MXU compute dtype.
    weight: [out_dim, in_dim] (PyTorch layout); bias/gamma/beta/mean/var: [out_dim]."""
    out_dim, in_dim = weight.shape
    _, _, _, np_, kp, _, _ = _tile_plan(in_dim, out_dim)

    scale = gamma / jnp.sqrt(running_var + eps)                 # [out_dim]
    w_folded = weight.T * scale[None, :]                        # [in_dim, out_dim]
    shift = bias * scale + (beta - running_mean * scale)        # [out_dim]

    w_p = jnp.zeros((kp, np_), COMPUTE_DTYPE).at[:in_dim, :out_dim].set(
        w_folded.astype(COMPUTE_DTYPE))
    s_p = jnp.zeros((1, np_), jnp.float32).at[0, :out_dim].set(
        shift.astype(jnp.float32))
    return w_p, s_p, (in_dim, out_dim)


@functools.partial(jax.jit, static_argnames=("in_dim", "out_dim"))
def mlp_layer_forward(x, w_p, s_p, *, in_dim, out_dim):
    """x: [B, in_dim] float32. Returns [B, out_dim] float32."""
    batch = x.shape[0]
    tm_plan, tn, tk, np_, kp, vmem, foot = _tile_plan(in_dim, out_dim)
    assert w_p.shape == (kp, np_) and s_p.shape == (1, np_)

    tm = min(tm_plan, _round_up(batch, SUBLANE))
    mp = _round_up(batch, tm)

    # Megacore (v7x): guarantee >=2 parallel (M,N) tiles so both TensorCores get work.
    if (mp // tm) * (np_ // tn) == 1:
        if tn >= 2 * LANE:
            tn //= 2
        elif tm >= 2 * SUBLANE and tm % (2 * SUBLANE) == 0:
            tm //= 2

    # Activation path: skip the HBM pad/cast pass entirely when already tile-aligned
    # (cast happens per-tile inside the kernel); otherwise pad + cast once.
    aligned = (mp == batch) and (kp == in_dim)
    if aligned:
        x_in = x
    else:
        x_in = jnp.zeros((mp, kp), COMPUTE_DTYPE).at[:batch, :in_dim].set(
            x.astype(COMPUTE_DTYPE))

    grid = (mp // tm, np_ // tn, kp // tk)

    # Deeper W' pipelining when weight-streaming bound (single M tile, several steps).
    if (mp // tm) == 1 and (np_ // tn) * (kp // tk) >= 4:
        w_spec = pl.BlockSpec((tk, tn), lambda i, j, k: (k, j),
                              pipeline_mode=pl.Buffered(3))
    else:
        w_spec = pl.BlockSpec((tk, tn), lambda i, j, k: (k, j))

    # Truthful memory cost: x streamed once per N tile, W' once per M tile.
    x_bytes = mp * kp * jnp.dtype(x_in.dtype).itemsize * (np_ // tn)
    w_bytes = kp * np_ * 2 * (mp // tm)
    s_bytes = np_ * 4 * (mp // tm)
    o_bytes = mp * np_ * 4
    cost = pl.CostEstimate(flops=2 * mp * kp * np_, transcendentals=0,
                           bytes_accessed=int(x_bytes + w_bytes + s_bytes + o_bytes))

    vmem_limit = int(min(vmem - (8 << 20), max(foot + (8 << 20), 32 << 20)))

    out_p = pl.pallas_call(
        mlp_layer_kernel,
        out_shape=jax.ShapeDtypeStruct((mp, np_), jnp.float32),
        grid_spec=pltpu.PrefetchScalarGridSpec(
            num_scalar_prefetch=0,
            grid=grid,
            in_specs=[
                pl.BlockSpec((tm, tk), lambda i, j, k: (i, k)),   # x tile
                w_spec,                                           # folded-W tile
                pl.BlockSpec((1, tn), lambda i, j, k: (0, j)),    # fused bias+shift tile
            ],
            out_specs=pl.BlockSpec((tm, tn), lambda i, j, k: (i, j)),
        ),
        compiler_params=pltpu.CompilerParams(
            dimension_semantics=("parallel", "parallel", "arbitrary"),
            vmem_limit_bytes=vmem_limit,
        ),
        cost_estimate=cost,
    )(x_in, w_p, s_p)

    if mp == batch and np_ == out_dim:
        return out_p
    return out_p[:batch, :out_dim]


if __name__ == "__main__":
    B, in_dim, out_dim = 8, 16, 32

    key = jax.random.PRNGKey(0)
    kx, kw, kb, kg, kbe, km, kv = jax.random.split(key, 7)

    x = jax.random.normal(kx, (B, in_dim), dtype=jnp.float32)

    # Deterministic synthetic parameters (PyTorch shapes: fc.weight [out,in], fc.bias [out]).
    weight = jax.random.normal(kw, (out_dim, in_dim), dtype=jnp.float32) * 0.1
    bias = jax.random.normal(kb, (out_dim,), dtype=jnp.float32) * 0.05
    gamma = 1.0 + 0.1 * jax.random.normal(kg, (out_dim,), dtype=jnp.float32)
    beta = 0.1 * jax.random.normal(kbe, (out_dim,), dtype=jnp.float32)
    running_mean = 0.1 * jax.random.normal(km, (out_dim,), dtype=jnp.float32)
    running_var = jnp.abs(1.0 + 0.1 * jax.random.normal(kv, (out_dim,), dtype=jnp.float32))

    # One-time parameter preparation (BN fold + lane-dense padding + bf16 cast).
    w_p, s_p, (kin, kout) = prepare_params(weight, bias, gamma, beta,
                                           running_mean, running_var)

    out = mlp_layer_forward(x, w_p, s_p, in_dim=kin, out_dim=kout)
    jax.block_until_ready(out)

    # Pure-JAX f32 reference. bf16 MXU inputs -> tolerance loosened vs f32-only path.
    ref = x @ weight.T + bias
    ref = (ref - running_mean) / jnp.sqrt(running_var + 1e-5) * gamma + beta
    ref = jnp.maximum(ref, 0.0)
    assert out.shape == ref.shape
    assert jnp.allclose(out, ref, atol=3e-2, rtol=3e-2), "mismatch vs reference"

    print("KERNEL_OK")
</pallas_src>

<mosaic_0001>
module attributes {stable_mosaic.version = 11 : i64} {
  func.func @mlp_layer_kernel(%arg0: i32, %arg1: i32, %arg2: i32, %arg3: memref<16x128xbf16, #tpu.memory_space<vmem>>, %arg4: memref<128x128xbf16, #tpu.memory_space<vmem>>, %arg5: memref<1x128xf32, #tpu.memory_space<vmem>>, %arg6: memref<16x128xf32, #tpu.memory_space<vmem>>) attributes {dimension_semantics = [#tpu.dimension_semantics<parallel>, #tpu.dimension_semantics<parallel>, #tpu.dimension_semantics<arbitrary>], iteration_bounds = array<i64: 1, 1, 1>, scalar_prefetch = 0 : i64, scratch_operands = 0 : i64, tpu.core_type = #tpu.core_type<tc>, window_params = [{transform_indices = @transform_0, window_bounds = array<i64: 16, 128>}, {transform_indices = @transform_1, window_bounds = array<i64: 128, 128>}, {transform_indices = @transform_2, window_bounds = array<i64: 1, 128>}, {transform_indices = @transform_3, window_bounds = array<i64: 16, 128>}]} {
    %c0_i32 = arith.constant 0 : i32
    %0 = arith.cmpi eq, %arg2, %c0_i32 : i32
    %1 = arith.extui %0 : i1 to i32
    %c0_i32_0 = arith.constant 0 : i32
    %2 = arith.cmpi ne, %1, %c0_i32_0 : i32
    scf.if %2 {
      %cst_10 = arith.constant 0.000000e+00 : f32
      %12 = vector.broadcast %cst_10 : f32 to vector<16x128xf32>
      %c0_11 = arith.constant 0 : index
      %c0_12 = arith.constant 0 : index
      %13 = vector.load %arg6[%c0_11, %c0_12] : memref<16x128xf32, #tpu.memory_space<vmem>>, vector<16x128xf32>
      tpu.vector_store %arg6[%c0_11, %c0_12], %12 {strides = array<i32>} : memref<16x128xf32, #tpu.memory_space<vmem>>, vector<16x128xf32>,
    } else {
    }
    %c0 = arith.constant 0 : index
    %c0_1 = arith.constant 0 : index
    %3 = vector.load %arg6[%c0, %c0_1] : memref<16x128xf32, #tpu.memory_space<vmem>>, vector<16x128xf32>
    %c0_2 = arith.constant 0 : index
    %c0_3 = arith.constant 0 : index
    %4 = vector.load %arg3[%c0_2, %c0_3] : memref<16x128xbf16, #tpu.memory_space<vmem>>, vector<16x128xbf16>
    %c0_4 = arith.constant 0 : index
    %c0_5 = arith.constant 0 : index
    %5 = vector.load %arg4[%c0_4, %c0_5] : memref<128x128xbf16, #tpu.memory_space<vmem>>, vector<128x128xbf16>
    %cst = arith.constant dense<0.000000e+00> : vector<16x128xf32>
    %6 = tpu.matmul %4, %5, %cst {dimension_numbers = #tpu.dot_dimension_numbers<[1], [0], [0], [1], [0, 0, 1, 1], [], []>} : vector<16x128xbf16>, vector<128x128xbf16>, vector<16x128xf32> -> vector<16x128xf32>
    %7 = arith.addf %3, %6 : vector<16x128xf32>
    %c0_6 = arith.constant 0 : index
    %c0_7 = arith.constant 0 : index
    %8 = vector.load %arg6[%c0_6, %c0_7] : memref<16x128xf32, #tpu.memory_space<vmem>>, vector<16x128xf32>
    tpu.vector_store %arg6[%c0_6, %c0_7], %7 {strides = array<i32>} : memref<16x128xf32, #tpu.memory_space<vmem>>, vector<16x128xf32>,
    %c0_i32_8 = arith.constant 0 : i32
    %9 = arith.cmpi eq, %arg2, %c0_i32_8 : i32
    %10 = arith.extui %9 : i1 to i32
    %c0_i32_9 = arith.constant 0 : i32
    %11 = arith.cmpi ne, %10, %c0_i32_9 : i32
    scf.if %11 {
      %c0_10 = arith.constant 0 : index
      %c0_11 = arith.constant 0 : index
      %12 = vector.load %arg6[%c0_10, %c0_11] : memref<16x128xf32, #tpu.memory_space<vmem>>, vector<16x128xf32>
      %c0_12 = arith.constant 0 : index
      %c0_13 = arith.constant 0 : index
      %13 = vector.load %arg5[%c0_12, %c0_13] : memref<1x128xf32, #tpu.memory_space<vmem>>, vector<1x128xf32>
      %14 = vector.broadcast %13 : vector<1x128xf32> to vector<16x128xf32>
      %15 = arith.addf %12, %14 : vector<16x128xf32>
      %cst_14 = arith.constant 0.000000e+00 : f32
      %16 = vector.broadcast %cst_14 : f32 to vector<16x128xf32>
      %17 = arith.maximumf %15, %16 : vector<16x128xf32>
      %c0_15 = arith.constant 0 : index
      %c0_16 = arith.constant 0 : index
      %18 = vector.load %arg6[%c0_15, %c0_16] : memref<16x128xf32, #tpu.memory_space<vmem>>, vector<16x128xf32>
      tpu.vector_store %arg6[%c0_15, %c0_16], %17 {strides = array<i32>} : memref<16x128xf32, #tpu.memory_space<vmem>>, vector<16x128xf32>,
    } else {
    }
    return
  }
  func.func @transform_0(%arg0: i32, %arg1: i32, %arg2: i32) -> (i32, i32) {
    %c0_i32 = arith.constant 0 : i32
    return %arg0, %arg2 : i32, i32
  }
  func.func @transform_1(%arg0: i32, %arg1: i32, %arg2: i32) -> (i32, i32) {
    %c0_i32 = arith.constant 0 : i32
    return %arg2, %arg1 : i32, i32
  }
  func.func @transform_2(%arg0: i32, %arg1: i32, %arg2: i32) -> (i32, i32) {
    %c0_i32 = arith.constant 0 : i32
    %c0_i32_0 = arith.constant 0 : i32
    return %c0_i32, %arg1 : i32, i32
  }
  func.func @transform_3(%arg0: i32, %arg1: i32, %arg2: i32) -> (i32, i32) {
    %c0_i32 = arith.constant 0 : i32
    return %arg0, %arg1 : i32, i32
  }
}

</mosaic_0001>

<bundles_post_ra>
// kernel: mlp_layer_forward.1
= control target key start
LH: loop header
LB: loop body
LE: loop exit
PB: predicated region body
PF: predicated region fallthrough
CT: control target
= control target key end

     0   :  { %8 = vsyncpa [#allocation3], 0  ;;  %s254_s12 = smov [#allocation2]   ;;  %s303_s0 = inlined_call_operand.vmem [shape: bf16[16,128], index: 0, kind: input, shape index: {}]   ;;  %s304_s1 = inlined_call_operand.hbm [shape: bf16[128,128], index: 1, kind: input, shape index: {}]   ;;  %s305_s2 = inlined_call_operand.vmem [shape: f32[1,128], index: 2, kind: input, shape index: {}]   ;;  %s306_s3 = inlined_call_operand.vmem [shape: f32[16,128], index: 3, kind: output, shape index: {}]  }
   0x1   :  { %s16_s13 = sshll.u32 %s254_s12, 4  ;;  %s230_s16 = scalar_lea.hbm %s304_s1, 1024  ;;  %s17_s13 = int_to_ptr.vmem [resolvable:$true] %s16_s13 }
   0x2   :  { %p231_p0 = scmp.ne.s32.totalorder %s304_s1, %s230_s16  ;;  %p234_p1 = scmp.lt.u32.totalorder %s230_s16, %s304_s1 }
   0x4   :  { %p236_p2 = pnand %p234_p1, %p231_p0 }
   0x6   :  { %239 = shalt.err (!%p236_p2)
}
   0x7   :  { %s240_s21 = scalar_lea.vmem %s17_s13, 1024  ;;  %p245_p4 = scmp.lt.s32.totalorder %s17_s13, %s17_s13 }
   0x8   :  { %p241_p3 = scmp.ne.s32.totalorder %s17_s13, %s240_s21  ;;  %p246_p5 = scmp.lt.s32.totalorder %s240_s21, %s240_s21 }
   0xa   :  { %p247_p6 = por %p246_p5, %p245_p4 }
   0xc   :  { %p248_p7 = pnand %p247_p6, %p241_p3 }
   0xe   :  { %251 = shalt.err (!%p248_p7)
}
   0xf   :  { %s255_s22 = smov 64   ;;  %s256_s23 = smov 4  }
  0x10   :  { %22 = dma.hbm_to_vmem [thread:$0]  %s304_s1, 1024, %s17_s13, [#allocation3], %s255_s22, %s255_s22, %s256_s23  }
  0x11   :  { %252 = dma.done.wait [#allocation3], 1024  }
  0x12   :  { %253 = vsyncadd [#allocation3], 4294966272  ;;  %v257_v0 = vmov 0.0   ;;  %vm258_vm0 = vmmov 0   ;;  %v221_v1 = vld [vmem:[#allocation2] sm:$0xff]   ;;  %v222_v2 = vld [vmem:[#allocation2 + $0x8] sm:$0xff]  }
  0x13   :  { %196 = vmatprep.subr.bf16.mxu0 %v257_v0  ;;  %212 = vmatprep.mubr.msk.bf16.mxu0 %vm258_vm0, %v257_v0  ;;  %v223_v3 = vld [vmem:[#allocation2 + $0x10] sm:$0xff]   ;;  %v224_v4 = vld [vmem:[#allocation2 + $0x18] sm:$0xff]   ;;  %v225_v5 = vld [vmem:[#allocation2 + $0x20] sm:$0xff]  }
  0x14   :  { %197 = vmatpush3.bf16.msra.mxu0 %v221_v1  ;;  %v226_v6 = vld [vmem:[#allocation2 + $0x28] sm:$0xff]   ;;  %v227_v7 = vld [vmem:[#allocation2 + $0x30] sm:$0xff]   ;;  %v228_v8 = vld [vmem:[#allocation2 + $0x38] sm:$0xff]  }
  0x15   :  { %198 = vmatprep.subr.bf16.mxu0 %v257_v0  ;;  %v229_v9 = vld [vmem:[%s303_s0] sm:$0xff]  }
  0x16   :  { %v186_v11 = vld [vmem:[%s305_s2] ss:$0 sm:$0xff] }
  0x18   :  { %199 = vmatpush3.bf16.msra.mxu0 %v222_v2 }
  0x19   :  { %200 = vmatprep.subr.bf16.mxu0 %v257_v0 }
  0x1c   :  { %201 = vmatpush3.bf16.msra.mxu0 %v223_v3 }
  0x1d   :  { %202 = vmatprep.subr.bf16.mxu0 %v257_v0 }
  0x20   :  { %203 = vmatpush3.bf16.msra.mxu0 %v224_v4 }
  0x21   :  { %204 = vmatprep.subr.bf16.mxu0 %v257_v0 }
  0x24   :  { %205 = vmatpush3.bf16.msra.mxu0 %v225_v5 }
  0x25   :  { %206 = vmatprep.subr.bf16.mxu0 %v257_v0 }
  0x28   :  { %207 = vmatpush3.bf16.msra.mxu0 %v226_v6 }
  0x29   :  { %208 = vmatprep.subr.bf16.mxu0 %v257_v0 }
  0x2c   :  { %209 = vmatpush3.bf16.msra.mxu0 %v227_v7 }
  0x2d   :  { %210 = vmatprep.subr.bf16.mxu0 %v257_v0 }
  0x30   :  { %211 = vmatpush3.bf16.msra.mxu0 %v228_v8 }
  0x33   :  { %213 = vmatmul.mubr.bf16.vlgmr.msra.gmra.mrb[0].mxu0 %v229_v9 }
 0x106   :  { %v143_v10 = vpop.f32.mrb[0].mxu0 }
 0x107   :  { %v214_v12 = vpop.f32.mrb[1].mxu0  ;;  %v166_v14 = vadd.f32 %v186_v11, %v143_v10 }
 0x108   :  { %v146_v13 = vpop.f32.mrb[2].mxu0 }
 0x109   :  { %v215_v15 = vpop.f32.mrb[3].mxu0  ;;  %v168_v16 = vmax.f32 %v166_v14, 0.0  ;;  %v167_v17 = vadd.f32 %v186_v11, %v146_v13 }
 0x10b   :  { %170 = vst [vmem:[%s306_s3] sm:$0xff] %v168_v16  ;;  %v169_v18 = vmax.f32 %v167_v17, 0.0 }
 0x10d   :  { %171 = vst [vmem:[%s306_s3 + $0x8] sm:$0xff] %v169_v18 }
 0x10e   :  { %176 = vsyncpa [#allocation3], 1 }

</bundles_post_ra>
